<compile_context>
chip_gen: v5e
topology: v5e:2x2
jax: 0.10.0
libtpu: 0.0.40
codegen_flags: <defaults>
</compile_context>

<pallas_src>
import functools

import jax
import jax.numpy as jnp
from jax import lax
from jax.experimental import pallas as pl
from jax.experimental.pallas import tpu as pltpu

# Conservative VMEM budgets valid across v5e (16 MiB default scoped),
# v6e (32 MiB / 128 MiB physical) and v7x (32 MiB / 64 MiB physical).
_VMEM_BUDGET = 24 * 1024 * 1024   # bytes allowed for pipeline buffers+scratch
_VMEM_LIMIT = 32 * 1024 * 1024    # scoped VMEM limit requested from Mosaic


def _round_up(x, m):
    return ((x + m - 1) // m) * m


def _cdiv(a, b):
    return -(-a // b)


def _pick_tb(batch, max_tb=512):
    """Batch tile: multiple of 16 (bf16 sublane packing), minimal padding,
    and >=2 tiles whenever the batch allows it (megacore / v7x dual-TC)."""
    b16 = _round_up(max(batch, 1), 16)
    if b16 <= 16:
        return 16
    n_tiles = max(2, _cdiv(b16, max_tb))
    return min(_round_up(_cdiv(b16, n_tiles), 16), max_tb)


def _pick_tk(d, tb, ncp, budget):
    """Largest multiple-of-128 divisor of d whose double-buffered footprint
    (f32 activation block + bf16 weight block) plus fixed scratch fits."""
    per_tk = 2 * (tb * 4 + ncp * 2)                      # dbuf x(f32)+w(bf16)
    fixed = tb * ncp * 4 + 2 * ncp * 4 + 2 * tb * 128 * 4
    max_tk = max(128, (budget - fixed) // per_tk)
    best = None
    tk = 128
    while tk <= min(d, max_tk):
        if d % tk == 0:
            best = tk
        tk += 128
    # Full-extent fallback is always a legal block dim (only reached when D
    # has no multiple-of-128 divisor under the budget).
    return best if best is not None else d


def _epilogue(logits, preds_ref, num_models, num_classes):
    """Per-model softmax on static slices of the packed class axis, sum of
    probabilities, argmax with first-index tie-breaking.  The /num_models
    mean is dropped (argmax is invariant to a positive constant scale) and
    padded lanes (>= M*NC) are never read, so no masking is needed."""
    tb = logits.shape[0]
    nc = num_classes
    prob_sum = jnp.zeros((tb, nc), jnp.float32)
    for m in range(num_models):
        lg = logits[:, m * nc:(m + 1) * nc]              # (tb, nc) f32
        mx = jnp.max(lg, axis=-1, keepdims=True)
        e = jnp.exp(lg - mx)
        denom = jnp.sum(e, axis=-1, keepdims=True)
        prob_sum = prob_sum + e / denom                  # exact (off crit path)
    idx = lax.broadcasted_iota(jnp.int32, (tb, nc), 1)
    mxv = jnp.max(prob_sum, axis=-1, keepdims=True)
    preds = jnp.min(jnp.where(prob_sum == mxv, idx, jnp.int32(nc)),
                    axis=-1, keepdims=True)              # (tb, 1)
    # Lane-dense int32 writeback (no 1-wide masked stores).
    preds_ref[...] = jnp.broadcast_to(preds, preds_ref.shape).astype(jnp.int32)


def _fused_kernel(x_ref, w_ref, b_ref, preds_ref, *, num_models, num_classes):
    """Grid = (batch tiles,).  Weight block index is constant -> DMA'd once
    and resident in VMEM for every batch tile.  No K axis, no accumulator."""
    logits = jnp.dot(x_ref[...].astype(jnp.bfloat16), w_ref[...],
                     preferred_element_type=jnp.float32)
    logits = logits + b_ref[...]
    _epilogue(logits, preds_ref, num_models, num_classes)


def _tiled_kernel(x_ref, w_ref, b_ref, preds_ref, acc_ref,
                  *, num_models, num_classes):
    """Grid = (batch tile i ['parallel'], K tile k ['arbitrary']).
    acc_ref: (tb, ncp) f32 logits accumulator in VMEM scratch."""
    k = pl.program_id(1)
    nk = pl.num_programs(1)

    @pl.when(k == 0)
    def _():
        acc_ref[...] = jnp.zeros_like(acc_ref)

    acc_ref[...] += jnp.dot(x_ref[...].astype(jnp.bfloat16), w_ref[...],
                            preferred_element_type=jnp.float32)

    @pl.when(k == nk - 1)
    def _():
        logits = acc_ref[...] + b_ref[...]
        _epilogue(logits, preds_ref, num_models, num_classes)


def pack_ensemble(weights, biases):
    """Static layout plumbing, hoisted out of the per-call path: pack every
    model's classifier along the class/N axis, pad to 128 lanes, cast weights
    to bf16 (streamed operand); biases stay f32 (tiny)."""
    m, d, nc = weights.shape
    assert biases.shape == (m, nc)
    ncp = _round_up(m * nc, 128)
    w = jnp.transpose(weights, (1, 0, 2)).reshape(d, m * nc)
    b = biases.reshape(1, m * nc)
    w = jnp.pad(w, ((0, 0), (0, ncp - m * nc))).astype(jnp.bfloat16)
    b = jnp.pad(b, ((0, 0), (0, ncp - m * nc))).astype(jnp.float32)
    return w, b


def soft_voting_ensemble(x_nchw, w_packed, b_packed, num_models, num_classes):
    """x_nchw: (B,C,H,W) f32; w_packed: (D, ncp) bf16; b_packed: (1, ncp) f32."""
    batch = x_nchw.shape[0]
    d, ncp = w_packed.shape

    # Activations stay f32 in HBM; the bf16 cast happens in-kernel (VMEM).
    x_flat = x_nchw.reshape(batch, d)

    tb = _pick_tb(batch)
    b_pad = _round_up(batch, tb)
    if b_pad != batch:
        x_flat = jnp.pad(x_flat, ((0, b_pad - batch), (0, 0)))

    # Worst-case VMEM footprint if the whole weight slab is made resident
    # (count double buffers conservatively for every operand).
    fused_vmem = (2 * d * ncp * 2 + 2 * tb * d * 4
                  + 2 * tb * 128 * 4 + 2 * ncp * 4)

    if fused_vmem <= _VMEM_BUDGET:
        kernel = functools.partial(_fused_kernel, num_models=num_models,
                                   num_classes=num_classes)
        preds_slab = pl.pallas_call(
            kernel,
            out_shape=jax.ShapeDtypeStruct((b_pad, 128), jnp.int32),
            grid_spec=pltpu.PrefetchScalarGridSpec(
                num_scalar_prefetch=0,
                grid=(b_pad // tb,),
                in_specs=[
                    # f32 activations: (tb, D) block walking the batch.
                    pl.BlockSpec((tb, d), lambda i: (i, 0)),
                    # packed bf16 weights: constant block index -> resident.
                    pl.BlockSpec((d, ncp), lambda i: (0, 0)),
                    # packed f32 biases: single tiny block.
                    pl.BlockSpec((1, ncp), lambda i: (0, 0)),
                ],
                out_specs=pl.BlockSpec((tb, 128), lambda i: (i, 0)),
            ),
            compiler_params=pltpu.CompilerParams(
                dimension_semantics=("parallel",),
                vmem_limit_bytes=_VMEM_LIMIT,
            ),
        )(x_flat, w_packed, b_packed)
    else:
        # Large-D regime: K tiles as big as the VMEM budget allows (fewer
        # ~0.35 us grid steps, larger DMAs).
        # TODO(synk): for very large D, a K-outer / batch-inner ordering would
        #             also avoid re-streaming each weight block per batch tile.
        tk = _pick_tk(d, tb, ncp, _VMEM_BUDGET)
        kernel = functools.partial(_tiled_kernel, num_models=num_models,
                                   num_classes=num_classes)
        preds_slab = pl.pallas_call(
            kernel,
            out_shape=jax.ShapeDtypeStruct((b_pad, 128), jnp.int32),
            grid_spec=pltpu.PrefetchScalarGridSpec(
                num_scalar_prefetch=0,
                grid=(b_pad // tb, d // tk),
                in_specs=[
                    pl.BlockSpec((tb, tk), lambda i, k: (i, k)),
                    pl.BlockSpec((tk, ncp), lambda i, k: (k, 0)),
                    pl.BlockSpec((1, ncp), lambda i, k: (0, 0)),
                ],
                out_specs=pl.BlockSpec((tb, 128), lambda i, k: (i, 0)),
                scratch_shapes=[pltpu.VMEM((tb, ncp), jnp.float32)],
            ),
            compiler_params=pltpu.CompilerParams(
                dimension_semantics=("parallel", "arbitrary"),
                vmem_limit_bytes=_VMEM_LIMIT,
            ),
        )(x_flat, w_packed, b_packed)

    return preds_slab[:batch, 0]


def _reference(x_nchw, weights, biases):
    """Pure-JAX reference using the same bf16-input / f32-accumulate matmul."""
    batch = x_nchw.shape[0]
    m, d, nc = weights.shape
    x_flat = x_nchw.reshape(batch, d).astype(jnp.bfloat16).astype(jnp.float32)
    w = weights.astype(jnp.bfloat16).astype(jnp.float32)
    logits = jnp.einsum("bd,mdc->mbc", x_flat, w) + biases[:, None, :]
    probs = jax.nn.softmax(logits, axis=-1)
    avg = jnp.mean(probs, axis=0)
    return jnp.argmax(avg, axis=-1).astype(jnp.int32)


if __name__ == "__main__":
    key = jax.random.PRNGKey(0)
    B, C, H, W = 2, 4, 16, 16
    NUM_MODELS, NUM_CLASSES = 3, 10
    D = C * H * W

    kx, kw, kb = jax.random.split(key, 3)
    x = jax.random.normal(kx, (B, C, H, W), dtype=jnp.float32)
    weights = jax.random.normal(kw, (NUM_MODELS, D, NUM_CLASSES),
                                dtype=jnp.float32) * 0.05
    biases = jax.random.normal(kb, (NUM_MODELS, NUM_CLASSES),
                               dtype=jnp.float32) * 0.1

    # Weight packing is static -> done once, outside the per-call path.
    w_packed, b_packed = pack_ensemble(weights, biases)

    preds = soft_voting_ensemble(x, w_packed, b_packed,
                                 NUM_MODELS, NUM_CLASSES)
    jax.block_until_ready(preds)

    ref = _reference(x, weights, biases)
    assert preds.shape == (B,)
    assert preds.dtype == jnp.int32
    assert bool(jnp.all(preds == ref)), (preds, ref)
    print("KERNEL_OK")
</pallas_src>

<mosaic_0001>
module attributes {stable_mosaic.version = 11 : i64} {
  func.func @_fused_kernel(%arg0: i32, %arg1: memref<16x1024xf32, #tpu.memory_space<vmem>>, %arg2: memref<1024x128xbf16, #tpu.memory_space<vmem>>, %arg3: memref<1x128xf32, #tpu.memory_space<vmem>>, %arg4: memref<16x128xi32, #tpu.memory_space<vmem>>) attributes {dimension_semantics = [#tpu.dimension_semantics<parallel>], iteration_bounds = array<i64: 1>, scalar_prefetch = 0 : i64, scratch_operands = 0 : i64, tpu.core_type = #tpu.core_type<tc>, window_params = [{transform_indices = @transform_0, window_bounds = array<i64: 16, 1024>}, {pipeline_mode = #tpu.pipeline_mode<synchronous>, transform_indices = @transform_1, window_bounds = array<i64: 1024, 128>}, {pipeline_mode = #tpu.pipeline_mode<synchronous>, transform_indices = @transform_2, window_bounds = array<i64: 1, 128>}, {transform_indices = @transform_3, window_bounds = array<i64: 16, 128>}]} {
    %c0 = arith.constant 0 : index
    %c0_0 = arith.constant 0 : index
    %0 = vector.load %arg1[%c0, %c0_0] : memref<16x1024xf32, #tpu.memory_space<vmem>>, vector<16x1024xf32>
    %1 = arith.truncf %0 : vector<16x1024xf32> to vector<16x1024xbf16>
    %c0_1 = arith.constant 0 : index
    %c0_2 = arith.constant 0 : index
    %2 = vector.load %arg2[%c0_1, %c0_2] : memref<1024x128xbf16, #tpu.memory_space<vmem>>, vector<1024x128xbf16>
    %cst = arith.constant dense<0.000000e+00> : vector<16x128xf32>
    %3 = tpu.matmul %1, %2, %cst {dimension_numbers = #tpu.dot_dimension_numbers<[1], [0], [0], [1], [0, 0, 1, 1], [], []>} : vector<16x1024xbf16>, vector<1024x128xbf16>, vector<16x128xf32> -> vector<16x128xf32>
    %c0_3 = arith.constant 0 : index
    %c0_4 = arith.constant 0 : index
    %4 = vector.load %arg3[%c0_3, %c0_4] : memref<1x128xf32, #tpu.memory_space<vmem>>, vector<1x128xf32>
    %5 = vector.broadcast %4 : vector<1x128xf32> to vector<16x128xf32>
    %6 = arith.addf %3, %5 : vector<16x128xf32>
    %cst_5 = arith.constant 0.000000e+00 : f32
    %7 = vector.broadcast %cst_5 : f32 to vector<16x10xf32>
    %8 = vector.extract_strided_slice %6 {offsets = [0, 0], sizes = [16, 10], strides = [1, 1]} : vector<16x128xf32> to vector<16x10xf32>
    %cst_6 = arith.constant dense<0xFF800000> : vector<16xf32>
    %9 = vector.multi_reduction <maximumf>, %8, %cst_6 [1] : vector<16x10xf32> to vector<16xf32>
    %10 = vector.shape_cast %9 : vector<16xf32> to vector<16x1xf32>
    %11 = vector.broadcast %10 : vector<16x1xf32> to vector<16x10xf32>
    %12 = arith.subf %8, %11 : vector<16x10xf32>
    %13 = math.exp %12 : vector<16x10xf32>
    %cst_7 = arith.constant dense<0.000000e+00> : vector<16xf32>
    %14 = vector.multi_reduction <add>, %13, %cst_7 [1] : vector<16x10xf32> to vector<16xf32>
    %15 = vector.shape_cast %14 : vector<16xf32> to vector<16x1xf32>
    %16 = vector.broadcast %15 : vector<16x1xf32> to vector<16x10xf32>
    %17 = arith.divf %13, %16 : vector<16x10xf32>
    %18 = arith.addf %7, %17 : vector<16x10xf32>
    %19 = vector.extract_strided_slice %6 {offsets = [0, 10], sizes = [16, 10], strides = [1, 1]} : vector<16x128xf32> to vector<16x10xf32>
    %cst_8 = arith.constant dense<0xFF800000> : vector<16xf32>
    %20 = vector.multi_reduction <maximumf>, %19, %cst_8 [1] : vector<16x10xf32> to vector<16xf32>
    %21 = vector.shape_cast %20 : vector<16xf32> to vector<16x1xf32>
    %22 = vector.broadcast %21 : vector<16x1xf32> to vector<16x10xf32>
    %23 = arith.subf %19, %22 : vector<16x10xf32>
    %24 = math.exp %23 : vector<16x10xf32>
    %cst_9 = arith.constant dense<0.000000e+00> : vector<16xf32>
    %25 = vector.multi_reduction <add>, %24, %cst_9 [1] : vector<16x10xf32> to vector<16xf32>
    %26 = vector.shape_cast %25 : vector<16xf32> to vector<16x1xf32>
    %27 = vector.broadcast %26 : vector<16x1xf32> to vector<16x10xf32>
    %28 = arith.divf %24, %27 : vector<16x10xf32>
    %29 = arith.addf %18, %28 : vector<16x10xf32>
    %30 = vector.extract_strided_slice %6 {offsets = [0, 20], sizes = [16, 10], strides = [1, 1]} : vector<16x128xf32> to vector<16x10xf32>
    %cst_10 = arith.constant dense<0xFF800000> : vector<16xf32>
    %31 = vector.multi_reduction <maximumf>, %30, %cst_10 [1] : vector<16x10xf32> to vector<16xf32>
    %32 = vector.shape_cast %31 : vector<16xf32> to vector<16x1xf32>
    %33 = vector.broadcast %32 : vector<16x1xf32> to vector<16x10xf32>
    %34 = arith.subf %30, %33 : vector<16x10xf32>
    %35 = math.exp %34 : vector<16x10xf32>
    %cst_11 = arith.constant dense<0.000000e+00> : vector<16xf32>
    %36 = vector.multi_reduction <add>, %35, %cst_11 [1] : vector<16x10xf32> to vector<16xf32>
    %37 = vector.shape_cast %36 : vector<16xf32> to vector<16x1xf32>
    %38 = vector.broadcast %37 : vector<16x1xf32> to vector<16x10xf32>
    %39 = arith.divf %35, %38 : vector<16x10xf32>
    %40 = arith.addf %29, %39 : vector<16x10xf32>
    %41 = tpu.iota {dimensions = array<i32: 1>} : vector<16x10xi32>
    %cst_12 = arith.constant dense<0xFF800000> : vector<16xf32>
    %42 = vector.multi_reduction <maximumf>, %40, %cst_12 [1] : vector<16x10xf32> to vector<16xf32>
    %43 = vector.shape_cast %42 : vector<16xf32> to vector<16x1xf32>
    %44 = vector.broadcast %43 : vector<16x1xf32> to vector<16x10xf32>
    %45 = arith.cmpf oeq, %40, %44 : vector<16x10xf32>
    %c10_i32 = arith.constant 10 : i32
    %46 = vector.broadcast %c10_i32 : i32 to vector<16x10xi32>
    %47 = arith.select %45, %41, %46 : vector<16x10xi1>, vector<16x10xi32>
    %cst_13 = arith.constant dense<2147483647> : vector<16xi32>
    %48 = vector.multi_reduction <minsi>, %47, %cst_13 [1] : vector<16x10xi32> to vector<16xi32>
    %49 = vector.shape_cast %48 : vector<16xi32> to vector<16x1xi32>
    %50 = vector.shape_cast %49 : vector<16x1xi32> to vector<16x1xi32>
    %51 = vector.broadcast %50 : vector<16x1xi32> to vector<16x128xi32>
    %c0_14 = arith.constant 0 : index
    %c0_15 = arith.constant 0 : index
    %52 = vector.load %arg4[%c0_14, %c0_15] : memref<16x128xi32, #tpu.memory_space<vmem>>, vector<16x128xi32>
    tpu.vector_store %arg4[%c0_14, %c0_15], %51 {strides = array<i32>} : memref<16x128xi32, #tpu.memory_space<vmem>>, vector<16x128xi32>,
    return
  }
  func.func @transform_0(%arg0: i32) -> (i32, i32) {
    %c0_i32 = arith.constant 0 : i32
    %c0_i32_0 = arith.constant 0 : i32
    return %arg0, %c0_i32 : i32, i32
  }
  func.func @transform_1(%arg0: i32) -> (i32, i32) {
    %c0_i32 = arith.constant 0 : i32
    %c0_i32_0 = arith.constant 0 : i32
    %c0_i32_1 = arith.constant 0 : i32
    return %c0_i32, %c0_i32_0 : i32, i32
  }
  func.func @transform_2(%arg0: i32) -> (i32, i32) {
    %c0_i32 = arith.constant 0 : i32
    %c0_i32_0 = arith.constant 0 : i32
    %c0_i32_1 = arith.constant 0 : i32
    return %c0_i32, %c0_i32_0 : i32, i32
  }
  func.func @transform_3(%arg0: i32) -> (i32, i32) {
    %c0_i32 = arith.constant 0 : i32
    %c0_i32_0 = arith.constant 0 : i32
    return %arg0, %c0_i32 : i32, i32
  }
}

</mosaic_0001>

<bundles_post_ra>
// kernel: tpu_custom_call.1
= control target key start
LH: loop header
LB: loop body
LE: loop exit
PB: predicated region body
PF: predicated region fallthrough
CT: control target
= control target key end

     0   :  { %8 = vsyncpa [#allocation3], 0  ;;  %s1471_s0 = inlined_call_operand.hbm [shape: f32[16,1024], index: 0, kind: input, shape index: {}]   ;;  %s1472_s1 = inlined_call_operand.hbm [shape: bf16[1024,128], index: 1, kind: input, shape index: {}]   ;;  %s1473_s2 = inlined_call_operand.vmem [shape: f32[1,128], index: 2, kind: input, shape index: {}]   ;;  %s1474_s3 = inlined_call_operand.hbm [shape: s32[16,128], index: 3, kind: output, shape index: {}]  }
   0x1   :  { %9 = vsyncpa [#allocation6], 0 }
   0x2   :  { %10 = vsyncpa [#allocation4], 0  ;;  %s15_s14 = sshll.u32 %s1471_s0, 4  ;;  %s1381_s15 = smov [#allocation2]   ;;  %s16_s14 = int_to_ptr.hbm [resolvable:$true] %s15_s14 }
   0x3   :  { %s17_s16 = sshll.u32 %s1381_s15, 4  ;;  %s28_s19 = sshll.u32 %s1472_s1, 4  ;;  %s18_s16 = int_to_ptr.vmem [resolvable:$true] %s17_s16  ;;  %s29_s19 = int_to_ptr.hbm [resolvable:$true] %s28_s19 }
   0x4   :  { %s1382_s20 = smov 1024   ;;  %s1383_s21 = smov 64  }
   0x5   :  { %23 = dma.hbm_to_vmem [thread:$0]  %s16_s14, 2048, %s18_s16, [#allocation3], %s1382_s20, %s1382_s20, %s1383_s21  }
   0x6   :  { %s1384_s22 = smov [#allocation5]   ;;  %s1385_s24 = smov 4  }
   0x7   :  { %s30_s23 = sshll.u32 %s1384_s22, 4  ;;  %s31_s23 = int_to_ptr.vmem [resolvable:$true] %s30_s23 }
   0x8   :  { %36 = dma.hbm_to_vmem [thread:$0]  %s29_s19, 8192, %s31_s23, [#allocation6], %s1383_s21, %s1383_s21, %s1385_s24  }
   0x9   :  { %1375 = dma.done.wait [#allocation3], 2048  }
   0xa   :  { %1376 = vsyncadd [#allocation3], 4294965248 }
   0xb   :  { %1377 = dma.done.wait [#allocation6], 8192  }
   0xc   :  { %1378 = vsyncadd [#allocation6], 4294959104  ;;  %v1211_v0 = vld [vmem:[#allocation5 + $0x38] sm:$0xff]  ;;  %v1210_v4 = vld [vmem:[#allocation5 + $0x30] sm:$0xff]  ;;  %vm817_vm0 = vcmask 244896   ;;  %vm750_vm1 = vcmask 162896  }
   0xd   :  { %v1219_v1 = vld [vmem:[#allocation5 + $0x78] sm:$0xff]  ;;  %587 = vmatpush.bf16.msra.mxu0 %v1211_v0  ;;  %v1218_v5 = vld [vmem:[#allocation5 + $0x70] sm:$0xff]  ;;  %v1209_v8 = vld [vmem:[#allocation5 + $0x28] sm:$0xff]  ;;  %s1387_s25 = smov 118   ;;  %vm699_vm2 = vcmask 80896   ;;  %s1388_s26 = smov [#allocation7]  }
   0xe   :  { %v1227_v2 = vld [vmem:[#allocation5 + $0xb8] sm:$0xff]  ;;  %601 = vmatpush.bf16.msra.mxu1 %v1219_v1  ;;  %v1226_v6 = vld [vmem:[#allocation5 + $0xb0] sm:$0xff]  ;;  %v1217_v9 = vld [vmem:[#allocation5 + $0x68] sm:$0xff]  ;;  %s932_s27 = sshll.u32 %s1388_s26, 4  ;;  %s934_s30 = sshll.u32 %s1474_s3, 4  ;;  %s933_s27 = int_to_ptr.vmem [resolvable:$true] %s932_s27  ;;  %s935_s30 = int_to_ptr.hbm [resolvable:$true] %s934_s30 }
   0xf   :  { %v1235_v3 = vld [vmem:[#allocation5 + $0xf8] sm:$0xff]  ;;  %615 = vmatpush.bf16.msra.mxu2 %v1227_v2  ;;  %v1234_v7 = vld [vmem:[#allocation5 + $0xf0] sm:$0xff]  ;;  %v1225_v10 = vld [vmem:[#allocation5 + $0xa8] sm:$0xff]  ;;  %s1389_s4 = smov 128   ;;  %s1390_s5 = smov 8  }
  0x10   :  { %629 = vmatpush.bf16.msra.mxu3 %v1235_v3  ;;  %v1233_v11 = vld [vmem:[#allocation5 + $0xe8] sm:$0xff]  ;;  %v1208_v12 = vld [vmem:[#allocation5 + $0x20] sm:$0xff]  ;;  %v1207_v16 = vld [vmem:[#allocation5 + $0x18] sm:$0xff] }
  0x11   :  { %588 = vmatpush.bf16.msra.mxu0 %v1210_v4  ;;  %v1216_v13 = vld [vmem:[#allocation5 + $0x60] sm:$0xff]  ;;  %v1215_v17 = vld [vmem:[#allocation5 + $0x58] sm:$0xff]  ;;  %v1206_v20 = vld [vmem:[#allocation5 + $0x10] sm:$0xff] }
  0x12   :  { %602 = vmatpush.bf16.msra.mxu1 %v1218_v5  ;;  %v1224_v14 = vld [vmem:[#allocation5 + $0xa0] sm:$0xff]  ;;  %v1223_v18 = vld [vmem:[#allocation5 + $0x98] sm:$0xff]  ;;  %v1214_v21 = vld [vmem:[#allocation5 + $0x50] sm:$0xff] }
  0x13   :  { %616 = vmatpush.bf16.msra.mxu2 %v1226_v6  ;;  %v1232_v15 = vld [vmem:[#allocation5 + $0xe0] sm:$0xff]  ;;  %v1231_v19 = vld [vmem:[#allocation5 + $0xd8] sm:$0xff]  ;;  %v1222_v22 = vld [vmem:[#allocation5 + $0x90] sm:$0xff] }
  0x14   :  { %630 = vmatpush.bf16.msra.mxu3 %v1234_v7  ;;  %v1230_v23 = vld [vmem:[#allocation5 + $0xd0] sm:$0xff]  ;;  %v1205_v24 = vld [vmem:[#allocation5 + $0x8] sm:$0xff]  ;;  %v1204_v28 = vld [vmem:[#allocation5] sm:$0xff] }
  0x15   :  { %589 = vmatpush.bf16.msra.mxu0 %v1209_v8  ;;  %v1213_v25 = vld [vmem:[#allocation5 + $0x48] sm:$0xff]  ;;  %v1212_v29 = vld [vmem:[#allocation5 + $0x40] sm:$0xff]  ;;  %v1243_v32 = vld [vmem:[#allocation5 + $0x138] sm:$0xff] }
  0x16   :  { %603 = vmatpush.bf16.msra.mxu1 %v1217_v9  ;;  %v1221_v26 = vld [vmem:[#allocation5 + $0x88] sm:$0xff]  ;;  %v1220_v30 = vld [vmem:[#allocation5 + $0x80] sm:$0xff]  ;;  %v1251_v33 = vld [vmem:[#allocation5 + $0x178] sm:$0xff] }
  0x17   :  { %617 = vmatpush.bf16.msra.mxu2 %v1225_v10  ;;  %v1229_v27 = vld [vmem:[#allocation5 + $0xc8] sm:$0xff]  ;;  %v1228_v31 = vld [vmem:[#allocation5 + $0xc0] sm:$0xff]  ;;  %v49_v34 = vld [vmem:[#allocation2 + $0x10] sm:$0xff] }
  0x18   :  { %631 = vmatpush.bf16.msra.mxu3 %v1233_v11  ;;  %v57_v35 = vld [vmem:[#allocation2 + $0x50] sm:$0xff]  ;;  %v47_v36 = vld [vmem:[#allocation2] sm:$0xff]  ;;  %v50_v38 = vld [vmem:[#allocation2 + $0x18] sm:$0xff] }
  0x19   :  { %590 = vmatpush.bf16.msra.mxu0 %v1208_v12  ;;  %v55_v37 = vld [vmem:[#allocation2 + $0x40] sm:$0xff]  ;;  %v58_v39 = vld [vmem:[#allocation2 + $0x58] sm:$0xff]  ;;  %v48_v40 = vld [vmem:[#allocation2 + $0x8] sm:$0xff]  ;;  %v65_v44 = vpack.c.bf16 %v57_v35, %v49_v34 }
  0x1a   :  { %604 = vmatpush.bf16.msra.mxu1 %v1216_v13  ;;  %v56_v41 = vld [vmem:[#allocation2 + $0x48] sm:$0xff]  ;;  %v1259_v42 = vld [vmem:[#allocation5 + $0x1b8] sm:$0xff]  ;;  %v63_v45 = vpack.c.bf16 %v55_v37, %v47_v36  ;;  %v66_v46 = vpack.c.bf16 %v58_v39, %v50_v38  ;;  %v1242_v48 = vld [vmem:[#allocation5 + $0x130] sm:$0xff] }
  0x1b   :  { %618 = vmatpush.bf16.msra.mxu2 %v1224_v14  ;;  %v1267_v43 = vld [vmem:[#allocation5 + $0x1f8] sm:$0xff]  ;;  %v64_v47 = vpack.c.bf16 %v56_v41, %v48_v40  ;;  %v1250_v49 = vld [vmem:[#allocation5 + $0x170] sm:$0xff]  ;;  %v1241_v52 = vld [vmem:[#allocation5 + $0x128] sm:$0xff] }
  0x1c   :  { %632 = vmatpush.bf16.msra.mxu3 %v1232_v15  ;;  %v1258_v50 = vld [vmem:[#allocation5 + $0x1b0] sm:$0xff]  ;;  %v1249_v53 = vld [vmem:[#allocation5 + $0x168] sm:$0xff]  ;;  %v1240_v56 = vld [vmem:[#allocation5 + $0x120] sm:$0xff] }
  0x1d   :  { %591 = vmatpush.bf16.msra.mxu0 %v1207_v16  ;;  %v1266_v51 = vld [vmem:[#allocation5 + $0x1f0] sm:$0xff]  ;;  %v1257_v54 = vld [vmem:[#allocation5 + $0x1a8] sm:$0xff]  ;;  %v1248_v57 = vld [vmem:[#allocation5 + $0x160] sm:$0xff] }
  0x1e   :  { %605 = vmatpush.bf16.msra.mxu1 %v1215_v17  ;;  %v1265_v55 = vld [vmem:[#allocation5 + $0x1e8] sm:$0xff]  ;;  %v1256_v58 = vld [vmem:[#allocation5 + $0x1a0] sm:$0xff]  ;;  %v1239_v60 = vld [vmem:[#allocation5 + $0x118] sm:$0xff] }
  0x1f   :  { %619 = vmatpush.bf16.msra.mxu2 %v1223_v18  ;;  %v1264_v59 = vld [vmem:[#allocation5 + $0x1e0] sm:$0xff]  ;;  %v1247_v61 = vld [vmem:[#allocation5 + $0x158] sm:$0xff]  ;;  %v1238_v0 = vld [vmem:[#allocation5 + $0x110] sm:$0xff] }
  0x20   :  { %633 = vmatpush.bf16.msra.mxu3 %v1231_v19  ;;  %v1255_v62 = vld [vmem:[#allocation5 + $0x198] sm:$0xff]  ;;  %v1246_v1 = vld [vmem:[#allocation5 + $0x150] sm:$0xff]  ;;  %v1237_v4 = vld [vmem:[#allocation5 + $0x108] sm:$0xff] }
  0x21   :  { %592 = vmatpush.bf16.msra.mxu0 %v1206_v20  ;;  %v1263_v63 = vld [vmem:[#allocation5 + $0x1d8] sm:$0xff]  ;;  %v1254_v2 = vld [vmem:[#allocation5 + $0x190] sm:$0xff]  ;;  %v1245_v5 = vld [vmem:[#allocation5 + $0x148] sm:$0xff] }
  0x22   :  { %606 = vmatpush.bf16.msra.mxu1 %v1214_v21  ;;  %v1262_v3 = vld [vmem:[#allocation5 + $0x1d0] sm:$0xff]  ;;  %v1253_v6 = vld [vmem:[#allocation5 + $0x188] sm:$0xff]  ;;  %v1236_v8 = vld [vmem:[#allocation5 + $0x100] sm:$0xff] }
  0x23   :  { %620 = vmatpush.bf16.msra.mxu2 %v1222_v22  ;;  %v1261_v7 = vld [vmem:[#allocation5 + $0x1c8] sm:$0xff]  ;;  %v1244_v9 = vld [vmem:[#allocation5 + $0x140] sm:$0xff]  ;;  %v53_v16 = vld [vmem:[#allocation2 + $0x30] sm:$0xff] }
  0x24   :  { %634 = vmatpush.bf16.msra.mxu3 %v1230_v23  ;;  %v1252_v10 = vld [vmem:[#allocation5 + $0x180] sm:$0xff]  ;;  %v52_v14 = vld [vmem:[#allocation2 + $0x28] sm:$0xff]  ;;  %v61_v17 = vld [vmem:[#allocation2 + $0x70] sm:$0xff] }
  0x25   :  { %593 = vmatpush.bf16.msra.mxu0 %v1205_v24  ;;  %v1260_v11 = vld [vmem:[#allocation5 + $0x1c0] sm:$0xff]  ;;  %v60_v15 = vld [vmem:[#allocation2 + $0x68] sm:$0xff]  ;;  %v54_v18 = vld [vmem:[#allocation2 + $0x38] sm:$0xff]  ;;  %v69_v22 = vpack.c.bf16 %v61_v17, %v53_v16 }
  0x26   :  { %607 = vmatpush.bf16.msra.mxu1 %v1213_v25  ;;  %v51_v12 = vld [vmem:[#allocation2 + $0x20] sm:$0xff]  ;;  %v62_v19 = vld [vmem:[#allocation2 + $0x78] sm:$0xff]  ;;  %v68_v21 = vpack.c.bf16 %v60_v15, %v52_v14 }
  0x27   :  { %621 = vmatpush.bf16.msra.mxu2 %v1221_v26  ;;  %v59_v13 = vld [vmem:[#allocation2 + $0x60] sm:$0xff]  ;;  %v70_v23 = vpack.c.bf16 %v62_v19, %v54_v18 }
  0x28   :  { %635 = vmatpush.bf16.msra.mxu3 %v1229_v27  ;;  %v67_v20 = vpack.c.bf16 %v59_v13, %v51_v12  ;;  %v1278_v25 = vld [vmem:[%s1473_s2] ss:$0 sm:$0xff]  ;;  %s1386_s2 = smov 108  }
  0x29   :  { %594 = vmatpush.bf16.msra.mxu0 %v1204_v28 }
  0x2a   :  { %608 = vmatpush.bf16.msra.mxu1 %v1212_v29 }
  0x2b   :  { %622 = vmatpush.bf16.msra.mxu2 %v1220_v30 }
  0x2c   :  { %636 = vmatpush.bf16.msra.mxu3 %v1228_v31  ;;  %595 = vmatmul.bf16.vlgmr.msra.gmra.mxu0 %v63_v45 }
  0x2d   :  { %643 = vmatpush.bf16.msrb.mxu0 %v1243_v32  ;;  %609 = vmatmul.bf16.vlgmr.msra.gmra.mxu1 %v64_v47 }
  0x2e   :  { %657 = vmatpush.bf16.msrb.mxu1 %v1251_v33  ;;  %623 = vmatmul.bf16.vlgmr.msra.gmra.mxu2 %v65_v44 }
  0x2f   :  { %671 = vmatpush.bf16.msrb.mxu2 %v1259_v42  ;;  %637 = vmatmul.bf16.vlgmr.msra.gmra.mxu3 %v66_v46 }
  0x30   :  { %685 = vmatpush.bf16.msrb.mxu3 %v1267_v43 }
  0x31   :  { %644 = vmatpush.bf16.msrb.mxu0 %v1242_v48 }
  0x32   :  { %658 = vmatpush.bf16.msrb.mxu1 %v1250_v49 }
  0x33   :  { %672 = vmatpush.bf16.msrb.mxu2 %v1258_v50 }
  0x34   :  { %686 = vmatpush.bf16.msrb.mxu3 %v1266_v51 }
  0x35   :  { %645 = vmatpush.bf16.msrb.mxu0 %v1241_v52 }
  0x36   :  { %659 = vmatpush.bf16.msrb.mxu1 %v1249_v53 }
  0x37   :  { %673 = vmatpush.bf16.msrb.mxu2 %v1257_v54 }
  0x38   :  { %687 = vmatpush.bf16.msrb.mxu3 %v1265_v55 }
  0x39   :  { %646 = vmatpush.bf16.msrb.mxu0 %v1240_v56 }
  0x3a   :  { %660 = vmatpush.bf16.msrb.mxu1 %v1248_v57 }
  0x3b   :  { %674 = vmatpush.bf16.msrb.mxu2 %v1256_v58 }
  0x3c   :  { %688 = vmatpush.bf16.msrb.mxu3 %v1264_v59 }
  0x3d   :  { %647 = vmatpush.bf16.msrb.mxu0 %v1239_v60 }
  0x3e   :  { %661 = vmatpush.bf16.msrb.mxu1 %v1247_v61 }
  0x3f   :  { %675 = vmatpush.bf16.msrb.mxu2 %v1255_v62 }
  0x40   :  { %689 = vmatpush.bf16.msrb.mxu3 %v1263_v63 }
  0x41   :  { %648 = vmatpush.bf16.msrb.mxu0 %v1238_v0 }
  0x42   :  { %662 = vmatpush.bf16.msrb.mxu1 %v1246_v1 }
  0x43   :  { %676 = vmatpush.bf16.msrb.mxu2 %v1254_v2 }
  0x44   :  { %690 = vmatpush.bf16.msrb.mxu3 %v1262_v3 }
  0x45   :  { %649 = vmatpush.bf16.msrb.mxu0 %v1237_v4 }
  0x46   :  { %663 = vmatpush.bf16.msrb.mxu1 %v1245_v5 }
  0x47   :  { %677 = vmatpush.bf16.msrb.mxu2 %v1253_v6 }
  0x48   :  { %691 = vmatpush.bf16.msrb.mxu3 %v1261_v7 }
  0x49   :  { %650 = vmatpush.bf16.msrb.mxu0 %v1236_v8 }
  0x4a   :  { %664 = vmatpush.bf16.msrb.mxu1 %v1244_v9 }
  0x4b   :  { %678 = vmatpush.bf16.msrb.mxu2 %v1252_v10 }
  0x4c   :  { %692 = vmatpush.bf16.msrb.mxu3 %v1260_v11  ;;  %651 = vmatmul.bf16.vlgmr.msrb.gmra.mxu0 %v67_v20 }
  0x4d   :  { %665 = vmatmul.bf16.vlgmr.msrb.gmra.mxu1 %v68_v21 }
  0x4e   :  { %679 = vmatmul.bf16.vlgmr.msrb.gmra.mxu2 %v69_v22 }
  0x4f   :  { %693 = vmatmul.bf16.vlgmr.msrb.gmra.mxu3 %v70_v23 }
  0xa9   :  { %v596_v24 = vpop.f32.mrf.mxu0 }
  0xaa   :  { %v610_v26 = vpop.f32.mrf.mxu1  ;;  %v597_v27 = vadd.f32 %v1278_v25, %v596_v24 }
  0xac   :  { %v611_v30 = vadd.f32 %v610_v26, %v597_v27 }
  0xb1   :  { %v624_v28 = vpop.f32.mrf.mxu2  ;;  %v598_v31 = vpop.f32.mrf.mxu0 }
  0xb2   :  { %v638_v29 = vpop.f32.mrf.mxu3  ;;  %v612_v32 = vpop.f32.mrf.mxu1  ;;  %v625_v33 = vadd.f32 %v624_v28, %v611_v30  ;;  %v599_v34 = vadd.f32 %v1278_v25, %v598_v31 }
  0xb4   :  { %v639_v37 = vadd.f32 %v638_v29, %v625_v33  ;;  %v613_v38 = vadd.f32 %v612_v32, %v599_v34 }
  0xb9   :  { %v626_v35 = vpop.f32.mrf.mxu2 }
  0xba   :  { %v640_v36 = vpop.f32.mrf.mxu3  ;;  %v627_v42 = vadd.f32 %v626_v35, %v613_v38 }
  0xbc   :  { %v641_v46 = vadd.f32 %v640_v36, %v627_v42 }
  0xc9   :  { %v652_v39 = vpop.f32.mrf.mxu0 }
  0xca   :  { %v653_v40 = vadd.f32 %v652_v39, %v639_v37  ;;  %v666_v41 = vpop.f32.mrf.mxu1 }
  0xcc   :  { %v667_v43 = vadd.f32 %v666_v41, %v653_v40 }
  0xd1   :  { %v680_v44 = vpop.f32.mrf.mxu2  ;;  %v654_v48 = vpop.f32.mrf.mxu0 }
  0xd2   :  { %v694_v45 = vpop.f32.mrf.mxu3  ;;  %v681_v47 = vadd.f32 %v680_v44, %v667_v43  ;;  %v655_v50 = vadd.f32 %v654_v48, %v641_v46  ;;  %v668_v53 = vpop.f32.mrf.mxu1 }
  0xd4   :  { %v1420_v49 = vadd.f32 %v694_v45, %v681_v47  ;;  %v669_v54 = vadd.f32 %v668_v53, %v655_v50 }
  0xd6   :  { %v818_v51 = vsel %vm817_vm0, %v1420_v49, -inf  ;;  %v751_v52 = vsel %vm750_vm1, %v1420_v49, -inf  ;;  %v700_v14 = vsel %vm699_vm2, %v1420_v49, -inf }
  0xd7   :  { %819 = vmax.xlane.f32.xlu1 %v818_v51  ;;  %752 = vmax.xlane.f32.xlu0 %v751_v52 }
  0xd9   :  { %v682_v55 = vpop.f32.mrf.mxu2 }
  0xda   :  { %v683_v56 = vadd.f32 %v682_v55, %v669_v54  ;;  %v696_v57 = vpop.f32.mrf.mxu3 }
  0xdc   :  { %v697_v58 = vadd.f32 %v696_v57, %v683_v56 }
  0xde   :  { %v821_v59 = vsel %vm817_vm0, %v697_v58, -inf  ;;  %v754_v60 = vsel %vm750_vm1, %v697_v58, -inf  ;;  %v703_v13 = vsel %vm699_vm2, %v697_v58, -inf }
  0xdf   :  { %822 = vmax.xlane.f32.xlu1 %v821_v59  ;;  %755 = vmax.xlane.f32.xlu0 %v754_v60 }
 0x14a   :  { %v820_v61 = vpop.xlane.xlu1 %819  ;;  %v753_v62 = vpop.xlane.xlu0 %752 }
 0x14b   :  { %v824_v63 = vsub.f32 %v1420_v49, %v820_v61  ;;  %v757_v0 = vsub.f32 %v1420_v49, %v753_v62 }
 0x14d   :  { %v826_v1 = vmul.f32 1.442695, %v824_v63  ;;  %v759_v2 = vmul.f32 1.442695, %v757_v0 }
 0x14f   :  { %1279 = vpow2.f32 %v826_v1 }
 0x150   :  { %1281 = vpow2.f32 %v759_v2 }
 0x152   :  { %v823_v3 = vpop.xlane.xlu1 %822  ;;  %v756_v4 = vpop.xlane.xlu0 %755 }
 0x153   :  { %v825_v5 = vsub.f32 %v697_v58, %v823_v3  ;;  %v758_v6 = vsub.f32 %v697_v58, %v756_v4 }
 0x155   :  { %v1426_v7 = vpop.eup %1279  ;;  %v828_v8 = vmul.f32 1.442695, %v825_v5  ;;  %v761_v9 = vmul.f32 1.442695, %v758_v6 }
 0x156   :  { %v1282_v10 = vpop.eup %1281  ;;  %832 = vrot.lane.b32.xlu0 %v1426_v7, %s1386_s2 }
 0x157   :  { %1283 = vpow2.f32 %v828_v8  ;;  %765 = vrot.lane.b32.xlu2 %v1282_v10, %s1387_s25 }
 0x158   :  { %1285 = vpow2.f32 %v761_v9 }
 0x15d   :  { %v1431_v11 = vpop.eup %1283 }
 0x15e   :  { %v1433_v12 = vpop.eup %1285  ;;  %834 = vrot.lane.b32.xlu1 %v1431_v11, %s1386_s2 }
 0x15f   :  { %767 = vrot.lane.b32.xlu2 %v1433_v12, %s1387_s25 }
 0x180   :  { %704 = vmax.xlane.f32.xlu0 %v703_v13 }
 0x188   :  { %701 = vmax.xlane.f32.xlu2 %v700_v14 }
 0x1b1   :  { %v766_v15 = vpop.permute.xlu2 %765 }
 0x1b2   :  { %v771_v16 = vsel %vm699_vm2, %v766_v15, 0.0 }
 0x1b3   :  { %772 = vadd.xlane.f32.xlu1 %v771_v16 }
 0x1b9   :  { %v768_v19 = vpop.permute.xlu2 %767 }
 0x1ba   :  { %v774_v20 = vsel %vm699_vm2, %v768_v19, 0.0 }
 0x1c8   :  { %v833_v17 = vpop.permute.xlu0 %832 }
 0x1c9   :  { %v838_v18 = vsel %vm699_vm2, %v833_v17, 0.0 }
 0x1ca   :  { %839 = vadd.xlane.f32.xlu2 %v838_v18 }
 0x1d0   :  { %v835_v21 = vpop.permute.xlu1 %834 }
 0x1d1   :  { %v841_v22 = vsel %vm699_vm2, %v835_v21, 0.0 }
 0x1d2   :  { %775 = vadd.xlane.f32.xlu2 %v774_v20 }
 0x1da   :  { %842 = vadd.xlane.f32.xlu2 %v841_v22 }
 0x1f3   :  { %v705_v23 = vpop.xlane.xlu0 %704 }
 0x1f4   :  { %v707_v24 = vsub.f32 %v697_v58, %v705_v23 }
 0x1f6   :  { %v710_v25 = vmul.f32 1.442695, %v707_v24 }
 0x1f8   :  { %1287 = vpow2.f32 %v710_v25 }
 0x1fb   :  { %v702_v26 = vpop.xlane.xlu2 %701 }
 0x1fc   :  { %v706_v27 = vsub.f32 %v1420_v49, %v702_v26 }
 0x1fe   :  { %v1447_v28 = vpop.eup %1287  ;;  %v708_v29 = vmul.f32 1.442695, %v706_v27 }
 0x1ff   :  { %v715_v30 = vsel %vm699_vm2, %v1447_v28, 0.0 }
 0x200   :  { %1289 = vpow2.f32 %v708_v29  ;;  %716 = vadd.xlane.f32.xlu2 %v715_v30 }
 0x206   :  { %v1451_v31 = vpop.eup %1289 }
 0x207   :  { %v712_v32 = vsel %vm699_vm2, %v1451_v31, 0.0 }
 0x208   :  { %713 = vadd.xlane.f32.xlu0 %v712_v32 }
 0x226   :  { %v773_v33 = vpop.xlane.xlu1 %772 }
 0x227   :  { %1291 = vrcp.f32 %v773_v33  ;;  %v788_v37 = vand.u32 2147483648, %v773_v33  ;;  %v786_v39 = vand.u32 2147483647, %v773_v33  ;;  %vm782_vm4 = vweird.f32 %v773_v33 }
 0x229   :  { %v789_v41 = vor.u32 1.1754944e-38, %v788_v37  ;;  %vm787_vm6 = vcmp.eq.f32.partialorder %v786_v39, 8.507059e+37 }
 0x22d   :  { %v1292_v34 = vpop.eup %1291 }
 0x22e   :  { %v778_v35 = vmul.f32 %v1292_v34, %v773_v33  ;;  %vm783_vm3 = vweird.f32 %v1292_v34 }
 0x22f   :  { %vm784_vm5 = vmor %vm782_vm4, %vm783_vm3 }
 0x230   :  { %v779_v36 = vsub.f32 1.0, %v778_v35 }
 0x232   :  { %v780_v38 = vmul.f32 %v1292_v34, %v779_v36 }
 0x234   :  { %v781_v40 = vadd.f32 %v1292_v34, %v780_v38 }
 0x236   :  { %v785_v42 = vsel %vm784_vm5, %v1292_v34, %v781_v40 }
 0x237   :  { %v790_v43 = vsel %vm787_vm6, %v789_v41, %v785_v42 }
 0x238   :  { %v791_v44 = vmul.f32 %v1282_v10, %v790_v43 }
 0x23a   :  { %809 = vrot.lane.b32.xlu1 %v791_v44, %s1387_s25 }
 0x23d   :  { %v840_v45 = vpop.xlane.xlu2 %839 }
 0x23e   :  { %1293 = vrcp.f32 %v840_v45  ;;  %v855_v50 = vand.u32 2147483648, %v840_v45  ;;  %v853_v52 = vand.u32 2147483647, %v840_v45  ;;  %vm849_vm8 = vweird.f32 %v840_v45 }
 0x240   :  { %v856_v55 = vor.u32 1.1754944e-38, %v855_v50  ;;  %vm854_vm10 = vcmp.eq.f32.partialorder %v853_v52, 8.507059e+37  ;;  %v884_v52 = vlaneseq }
 0x244   :  { %v1294_v46 = vpop.eup %1293 }
 0x245   :  { %v845_v47 = vmul.f32 %v1294_v46, %v840_v45  ;;  %v776_v48 = vpop.xlane.xlu2 %775  ;;  %vm850_vm7 = vweird.f32 %v1294_v46 }
 0x246   :  { %1295 = vrcp.f32 %v776_v48  ;;  %vm851_vm9 = vmor %vm849_vm8, %vm850_vm7  ;;  %v803_v62 = vand.u32 2147483648, %v776_v48  ;;  %v801_v0 = vand.u32 2147483647, %v776_v48  ;;  %vm797_vm12 = vweird.f32 %v776_v48 }
 0x247   :  { %v846_v49 = vsub.f32 1.0, %v845_v47 }
 0x248   :  { %v804_v3 = vor.u32 1.1754944e-38, %v803_v62  ;;  %vm802_vm14 = vcmp.eq.f32.partialorder %v801_v0, 8.507059e+37 }
 0x249   :  { %v847_v51 = vmul.f32 %v1294_v46, %v846_v49 }
 0x24b   :  { %v848_v53 = vadd.f32 %v1294_v46, %v847_v51 }
 0x24c   :  { %v1296_v54 = vpop.eup %1295 }
 0x24d   :  { %v793_v56 = vmul.f32 %v1296_v54, %v776_v48  ;;  %v843_v57 = vpop.xlane.xlu2 %842  ;;  %v852_v58 = vsel %vm851_vm9, %v1294_v46, %v848_v53  ;;  %vm798_vm11 = vweird.f32 %v1296_v54  ;;  %v885_v53 = vand.u32 127, %v884_v52 }
 0x24e   :  { %1297 = vrcp.f32 %v843_v57  ;;  %v857_v59 = vsel %vm854_vm10, %v856_v55, %v852_v58  ;;  %vm799_vm13 = vmor %vm797_vm12, %vm798_vm11  ;;  %v870_v10 = vand.u32 2147483648, %v843_v57  ;;  %v868_v13 = vand.u32 2147483647, %v843_v57 }
 0x24f   :  { %v794_v60 = vsub.f32 1.0, %v793_v56  ;;  %v858_v61 = vmul.f32 %v1426_v7, %v857_v59  ;;  %vm864_vm0 = vweird.f32 %v843_v57 }
 0x250   :  { %v871_v15 = vor.u32 1.1754944e-38, %v870_v10  ;;  %vm869_vm3 = vcmp.eq.f32.partialorder %v868_v13, 8.507059e+37 }
 0x251   :  { %v795_v63 = vmul.f32 %v1296_v54, %v794_v60  ;;  %876 = vrot.lane.b32.xlu2 %v858_v61, %s1386_s2 }
 0x253   :  { %v796_v1 = vadd.f32 %v1296_v54, %v795_v63 }
 0x254   :  { %v1298_v2 = vpop.eup %1297 }
 0x255   :  { %v860_v4 = vmul.f32 %v1298_v2, %v843_v57  ;;  %v800_v5 = vsel %vm799_vm13, %v1296_v54, %v796_v1  ;;  %vm865_vm15 = vweird.f32 %v1298_v2 }
 0x256   :  { %v805_v6 = vsel %vm802_vm14, %v804_v3, %v800_v5  ;;  %vm866_vm1 = vmor %vm864_vm0, %vm865_vm15 }
 0x257   :  { %v861_v8 = vsub.f32 1.0, %v860_v4  ;;  %v806_v9 = vmul.f32 %v1433_v12, %v805_v6 }
 0x259   :  { %v862_v7 = vmul.f32 %v1298_v2, %v861_v8  ;;  %811 = vrot.lane.b32.xlu0 %v806_v9, %s1387_s25 }
 0x25b   :  { %v863_v14 = vadd.f32 %v1298_v2, %v862_v7 }
 0x25d   :  { %v867_v16 = vsel %vm866_vm1, %v1298_v2, %v863_v14 }
 0x25e   :  { %v872_v17 = vsel %vm869_vm3, %v871_v15, %v867_v16 }
 0x25f   :  { %v873_v18 = vmul.f32 %v1431_v11, %v872_v17 }
 0x261   :  { %878 = vrot.lane.b32.xlu0 %v873_v18, %s1386_s2 }
 0x273   :  { %v717_v27 = vpop.xlane.xlu2 %716 }
 0x274   :  { %v744_v42 = vand.u32 2147483648, %v717_v27  ;;  %vm738_vm9 = vweird.f32 %v717_v27  ;;  %v742_v43 = vand.u32 2147483647, %v717_v27 }
 0x276   :  { %v745_v45 = vor.u32 1.1754944e-38, %v744_v42  ;;  %vm743_vm11 = vcmp.eq.f32.partialorder %v742_v43, 8.507059e+37 }
 0x27b   :  { %v714_v19 = vpop.xlane.xlu0 %713 }
 0x27c   :  { %1299 = vrcp.f32 %v714_v19  ;;  %v729_v24 = vand.u32 2147483648, %v714_v19  ;;  %vm723_vm5 = vweird.f32 %v714_v19  ;;  %v727_v25 = vand.u32 2147483647, %v714_v19 }
 0x27d   :  { %1301 = vrcp.f32 %v717_v27 }
 0x27e   :  { %v730_v29 = vor.u32 1.1754944e-38, %v729_v24  ;;  %vm728_vm7 = vcmp.eq.f32.partialorder %v727_v25, 8.507059e+37 }
 0x282   :  { %v1300_v12 = vpop.eup %1299 }
 0x283   :  { %v719_v20 = vmul.f32 %v1300_v12, %v714_v19  ;;  %vm724_vm4 = vweird.f32 %v1300_v12  ;;  %v1302_v37 = vpop.eup %1301 }
 0x284   :  { %vm725_vm6 = vmor %vm723_vm5, %vm724_vm4  ;;  %v734_v38 = vmul.f32 %v1302_v37, %v717_v27  ;;  %vm739_vm8 = vweird.f32 %v1302_v37 }
 0x285   :  { %v720_v21 = vsub.f32 1.0, %v719_v20  ;;  %vm740_vm10 = vmor %vm738_vm9, %vm739_vm8 }
 0x286   :  { %v735_v39 = vsub.f32 1.0, %v734_v38 }
 0x287   :  { %v721_v22 = vmul.f32 %v1300_v12, %v720_v21 }
 0x288   :  { %v736_v40 = vmul.f32 %v1302_v37, %v735_v39 }
 0x289   :  { %v722_v23 = vadd.f32 %v1300_v12, %v721_v22 }
 0x28a   :  { %v737_v41 = vadd.f32 %v1302_v37, %v736_v40 }
 0x28b   :  { %v726_v26 = vsel %vm725_vm6, %v1300_v12, %v722_v23 }
 0x28c   :  { %v731_v30 = vsel %vm728_vm7, %v730_v29, %v726_v26  ;;  %v741_v44 = vsel %vm740_vm10, %v1302_v37, %v737_v41 }
 0x28d   :  { %v732_v11 = vmul.f32 %v1451_v31, %v731_v30  ;;  %v746_v46 = vsel %vm743_vm11, %v745_v45, %v741_v44 }
 0x28e   :  { %v747_v47 = vmul.f32 %v1447_v28, %v746_v46 }
 0x2ab   :  { %v877_v34 = vpop.permute.xlu2 %876 }
 0x2ac   :  { %v810_v32 = vpop.permute.xlu1 %809 }
 0x2ad   :  { %v815_v33 = vadd.f32 %v810_v32, %v732_v11 }
 0x2af   :  { %v882_v35 = vadd.f32 %v877_v34, %v815_v33 }
 0x2b1   :  { %v886_v36 = vsel %vm699_vm2, %v882_v35, -inf }
 0x2b2   :  { %887 = vmax.xlane.f32.xlu1 %v886_v36 }
 0x2cb   :  { %v812_v31 = vpop.permute.xlu0 %811 }
 0x2cc   :  { %v816_v48 = vadd.f32 %v812_v31, %v747_v47 }
 0x2d3   :  { %v879_v49 = vpop.permute.xlu0 %878 }
 0x2d4   :  { %v883_v50 = vadd.f32 %v879_v49, %v816_v48 }
 0x2d6   :  { %v889_v51 = vsel %vm699_vm2, %v883_v50, -inf }
 0x2d7   :  { %890 = vmax.xlane.f32.xlu2 %v889_v51 }
 0x325   :  { %v888_v54 = vpop.xlane.xlu1 %887 }
 0x326   :  { %vm892_vm12 = vcmp.eq.f32.partialorder %v882_v35, %v888_v54 }
 0x327   :  { %v894_v55 = vsel %vm892_vm12, %v885_v53, 10 }
 0x328   :  { %v896_v56 = vsel %vm699_vm2, %v894_v55, 2147483647 }
 0x329   :  { %v898_v57 = vshra.s32 %v896_v56, 16  ;;  %v897_v63 = vand.u32 65535, %v896_v56 }
 0x32b   :  { %v900_v58 = vcvt.s32.f32 %v898_v57  ;;  %v899_v1 = vcvt.s32.f32 %v897_v63 }
 0x32d   :  { %901 = vmin.xlane.f32.xlu0 %v900_v58 }
 0x34a   :  { %v891_v59 = vpop.xlane.xlu2 %890 }
 0x34b   :  { %vm893_vm13 = vcmp.eq.f32.partialorder %v883_v50, %v891_v59 }
 0x34c   :  { %v895_v60 = vsel %vm893_vm13, %v885_v53, 10 }
 0x34d   :  { %v911_v28 = vsel %vm699_vm2, %v895_v60, 2147483647 }
 0x34e   :  { %v913_v61 = vshra.s32 %v911_v28, 16  ;;  %v912_v3 = vand.u32 65535, %v911_v28 }
 0x350   :  { %v915_v62 = vcvt.s32.f32 %v913_v61  ;;  %v914_v5 = vcvt.s32.f32 %v912_v3 }
 0x352   :  { %916 = vmin.xlane.f32.xlu1 %v915_v62 }
 0x3a0   :  { %v902_v0 = vpop.xlane.xlu0 %901 }
 0x3a1   :  { %vm903_vm14 = vcmp.eq.f32.partialorder %v900_v58, %v902_v0  ;;  %v908_v8 = vcvt.f32.s32 %v902_v0 }
 0x3a2   :  { %v904_v2 = vsel %vm903_vm14, %v899_v1, inf }
 0x3a3   :  { %905 = vmin.xlane.f32.xlu2 %v904_v2  ;;  %v909_v10 = vshll.u32 %v908_v8, 16 }
 0x3c5   :  { %v917_v4 = vpop.xlane.xlu1 %916 }
 0x3c6   :  { %vm918_vm15 = vcmp.eq.f32.partialorder %v915_v62, %v917_v4  ;;  %v923_v14 = vcvt.f32.s32 %v917_v4 }
 0x3c7   :  { %v919_v6 = vsel %vm918_vm15, %v914_v5, inf }
 0x3c8   :  { %920 = vmin.xlane.f32.xlu0 %v919_v6  ;;  %v924_v16 = vshll.u32 %v923_v14, 16 }
 0x416   :  { %v906_v9 = vpop.xlane.xlu2 %905 }
 0x417   :  { %v907_v7 = vcvt.f32.s32 %v906_v9 }
 0x419   :  { %v910_v13 = vadd.s32 %v909_v10, %v907_v7 }
 0x41b   :  { %926 = vst [vmem:[#allocation7] sm:$0xff] %v910_v13 }
 0x43b   :  { %v921_v15 = vpop.xlane.xlu0 %920 }
 0x43c   :  { %v922_v17 = vcvt.f32.s32 %v921_v15 }
 0x43e   :  { %v925_v18 = vadd.s32 %v924_v16, %v922_v17 }
 0x440   :  { %927 = vst [vmem:[#allocation7 + $0x8] sm:$0xff] %v925_v18 }
 0x441   :  { %940 = dma.vmem_to_hbm [thread:$0]  %s933_s27, 256, %s935_s30, [#allocation4], %s1389_s4, %s1389_s4, %s1390_s5  }
 0x442   :  { %1379 = dma.done.wait [#allocation4], 256  }
 0x443   :  { %1380 = vsyncadd [#allocation4], 4294967040 }
 0x444   :  { %945 = vsyncpa [#allocation3], 1 }
 0x445   :  { %946 = vsyncpa [#allocation6], 1 }
 0x446   :  { %947 = vsyncpa [#allocation4], 1 }

</bundles_post_ra>
